<compile_context>
chip_gen: v6e
topology: v6e:2x2x1
jax: 0.10.0
libtpu: 0.0.40
codegen_flags: <defaults>
</compile_context>

<pallas_src>
import jax
import jax.numpy as jnp
from jax import lax
from jax.experimental import pallas as pl
from jax.experimental.pallas import tpu as pltpu


# ----------------------------------------------------------------------------
# Kernel
# ----------------------------------------------------------------------------
def make_fused_block_kernel(NB, H, WC, WCo):
    """Fused: conv1(3x3,pad1)+BN+ReLU -> conv2(3x3,pad1)+BN -> + residual."""
    M = NB * H               # matmul M dim: NB images stacked along rows
    f32 = jnp.float32
    bf16 = jnp.bfloat16

    def shifted_cat(a):
        """a: (M, Wd) f32 -> (M, 3*Wd) bf16 operand [row h-1 | row h | row h+1].

        Row shifts are sublane rolls (XLU); rows that would cross a per-image
        H boundary (top/bottom zero padding) are masked to zero.
        """
        Wd = a.shape[1]
        row = lax.broadcasted_iota(jnp.int32, (M, Wd), 0) % H
        up = pltpu.roll(a, 1, axis=0)        # row r <- row r-1   (ky = 0 tap)
        dn = pltpu.roll(a, M - 1, axis=0)    # row r <- row r+1   (ky = 2 tap)
        a_m1 = jnp.where(row != 0, up, 0.0)
        a_p1 = jnp.where(row != H - 1, dn, 0.0)
        # Single bf16 cast of the K = 3*Wd lane-concatenated operand.
        return jnp.concatenate([a_m1, a, a_p1], axis=-1).astype(bf16)

    def kernel(x_ref, w1_ref, b1_ref, w2_ref, b2_ref, o_ref):
        x = x_ref[...]                                            # (M, WC) f32

        # ---- conv1 (+ folded BN + ReLU): ONE K=3*WC matmul ----
        acc1 = jnp.dot(shifted_cat(x), w1_ref[...],
                       preferred_element_type=f32)                # (M, WCo)
        h1 = jnp.maximum(acc1 + b1_ref[...], 0.0)

        # ---- conv2 (+ folded BN) + residual add (no final ReLU) ----
        acc2 = jnp.dot(shifted_cat(h1), w2_ref[...],
                       preferred_element_type=f32)
        o_ref[...] = (acc2 + b2_ref[...] + x).astype(o_ref.dtype)

    return kernel


# ----------------------------------------------------------------------------
# Host-side parameter preparation
# ----------------------------------------------------------------------------
def fold_bn(gamma, beta, mean, var, eps=1e-5):
    scale = gamma / jnp.sqrt(var + eps)
    bias = beta - mean * scale
    return scale, bias


def banded_conv_weights(w_oihw, W, scale):
    """(Cout, Cin, 3, 3) torch conv weight -> (3*W*Cin, W*Cout) stacked bands.

    Band ky: B[ky][wi*Cin + ci, wo*Cout + co] = w[co, ci, ky, kx] * scale[co]
    with kx = wi - wo + 1 in {0,1,2}.  Band truncation at wo = 0 / W-1
    implements the zero padding (pad=1) in the W direction.  The three ky
    bands are stacked along K to match the in-kernel lane concatenation
    [row h-1 | row h | row h+1].
    """
    Cout, Cin, KH, KW = w_oihw.shape
    wt = jnp.transpose(w_oihw, (2, 3, 1, 0)) * scale[None, None, None, :]
    bands = []
    for ky in range(KH):
        b = jnp.zeros((W * Cin, W * Cout), wt.dtype)
        for kx in range(KW):
            # ones at (wi, wo) with wi - wo = kx - 1  ->  eye offset k = 1 - kx
            shift = jnp.eye(W, k=1 - kx, dtype=wt.dtype)
            b = b + jnp.kron(shift, wt[ky, kx])
        bands.append(b)
    return jnp.concatenate(bands, axis=0)        # (3*W*Cin, W*Cout)


def _pick_images_per_step(N, H, target_rows=256):
    """Largest divisor NB of N with NB*H <= target_rows (grow matmul M dim)."""
    nb = 1
    for cand in range(1, N + 1):
        if N % cand == 0 and cand * H <= target_rows:
            nb = cand
    return nb


# ----------------------------------------------------------------------------
# Forward pass (wrapper around the fused pallas_call)
# ----------------------------------------------------------------------------
def basic_block_forward(x_nchw, params, *, stride=1, pad=1, dilation=1,
                        downsample=None):
    """Pallas implementation of BasicBlock.forward for the stride=1,
    pad=1, dilation=1, downsample=None configuration."""
    assert stride == 1 and pad == 1 and dilation == 1 and downsample is None, (
        "Pallas BasicBlock kernel implements stride=1/pad=1/dilation=1/"
        "downsample=None only")

    N, C, H, W = x_nchw.shape
    Cout = params["conv1_w"].shape[0]
    assert params["conv2_w"].shape[0] == Cout and Cout == C, (
        "residual add requires inplanes == planes when downsample is None")

    WC, WCo = W * C, W * Cout
    # Perf note: layout is lane-dense only when W*C is a multiple of 128
    # (true for the demo W*C = 16*8 = 128); other shapes still run correctly
    # but with masked lane stores.
    NB = _pick_images_per_step(N, H)
    M = NB * H

    # NCHW -> (N*H, W*C): channel-fastest lane layout, images stacked in rows.
    x = jnp.transpose(x_nchw, (0, 2, 3, 1)).reshape(N * H, WC)

    s1, b1 = fold_bn(params["bn1_g"], params["bn1_b"],
                     params["bn1_m"], params["bn1_v"])
    s2, b2 = fold_bn(params["bn2_g"], params["bn2_b"],
                     params["bn2_m"], params["bn2_v"])

    # BN scale folded into the weights (f32), then cast to bf16 for the MXU.
    w1 = banded_conv_weights(params["conv1_w"], W, s1).astype(jnp.bfloat16)
    w2 = banded_conv_weights(params["conv2_w"], W, s2).astype(jnp.bfloat16)
    b1v = jnp.tile(b1, W)[None, :].astype(jnp.float32)       # (1, W*Cout)
    b2v = jnp.tile(b2, W)[None, :].astype(jnp.float32)

    kernel = make_fused_block_kernel(NB, H, WC, WCo)

    # True conv FLOPs (not the inflated banded count).
    flops = 2 * N * H * W * 9 * (C * Cout + Cout * Cout)
    bytes_accessed = ((x.size + N * H * WCo) * 4             # f32 acts in/out
                      + (w1.size + w2.size) * 2              # bf16 weights
                      + (b1v.size + b2v.size) * 4)           # f32 biases

    out = pl.pallas_call(
        kernel,
        out_shape=jax.ShapeDtypeStruct((N * H, WCo), jnp.float32),
        grid_spec=pltpu.PrefetchScalarGridSpec(
            num_scalar_prefetch=0,
            grid=(N // NB,),
            in_specs=[
                pl.BlockSpec((M, WC), lambda n: (n, 0)),          # NB images
                pl.BlockSpec((3 * WC, WCo), lambda n: (0, 0)),    # conv1 bands
                pl.BlockSpec((1, WCo), lambda n: (0, 0)),         # bn1 bias
                pl.BlockSpec((3 * WCo, WCo), lambda n: (0, 0)),   # conv2 bands
                pl.BlockSpec((1, WCo), lambda n: (0, 0)),         # bn2 bias
            ],
            out_specs=pl.BlockSpec((M, WCo), lambda n: (n, 0)),
        ),
        compiler_params=pltpu.CompilerParams(
            dimension_semantics=("parallel",),        # image blocks shard on TCs
            vmem_limit_bytes=32 * 1024 * 1024,        # safe on v5e/v6e/v7x
        ),
        cost_estimate=pl.CostEstimate(
            flops=flops, transcendentals=0, bytes_accessed=bytes_accessed),
    )(x, w1, b1v, w2, b2v)

    # (N*H, W*Cout) -> NCHW
    return jnp.transpose(out.reshape(N, H, W, Cout), (0, 3, 1, 2))


# ----------------------------------------------------------------------------
# Pure-JAX reference (mirrors the kernel's bf16 matmul-operand rounding so the
# comparison tolerance stays tight; accumulation is f32 in both).
# ----------------------------------------------------------------------------
def reference_forward(x_nchw, params):
    x = jnp.transpose(x_nchw, (0, 2, 3, 1))                   # NHWC

    def conv_bn(inp, w_oihw, g, b, m, v, relu):
        s, bb = fold_bn(g, b, m, v)
        w_hwio = jnp.transpose(w_oihw, (2, 3, 1, 0)) * s[None, None, None, :]
        y = jax.lax.conv_general_dilated(
            inp.astype(jnp.bfloat16), w_hwio.astype(jnp.bfloat16),
            window_strides=(1, 1), padding=((1, 1), (1, 1)),
            dimension_numbers=("NHWC", "HWIO", "NHWC"),
            preferred_element_type=jnp.float32)
        y = y + bb
        return jnp.maximum(y, 0.0) if relu else y

    out = conv_bn(x, params["conv1_w"], params["bn1_g"], params["bn1_b"],
                  params["bn1_m"], params["bn1_v"], True)
    out = conv_bn(out, params["conv2_w"], params["bn2_g"], params["bn2_b"],
                  params["bn2_m"], params["bn2_v"], False)
    out = out + x                   # this BasicBlock has no ReLU after the add
    return jnp.transpose(out, (0, 3, 1, 2))


# ----------------------------------------------------------------------------
if __name__ == "__main__":
    # BasicBlock(inplanes=planes=8, stride=1, downsample=None, pad=1, dilation=1)
    # W*C = 16*8 = 128 -> fully lane-dense layout.
    N, C, H, W = 2, 8, 16, 16
    planes = C

    key = jax.random.PRNGKey(0)
    ks = jax.random.split(key, 11)
    x = jax.random.normal(ks[0], (N, C, H, W), jnp.float32)

    params = {
        "conv1_w": 0.1 * jax.random.normal(ks[1], (planes, C, 3, 3), jnp.float32),
        "bn1_g": 1.0 + 0.1 * jax.random.normal(ks[2], (planes,), jnp.float32),
        "bn1_b": 0.1 * jax.random.normal(ks[3], (planes,), jnp.float32),
        "bn1_m": 0.05 * jax.random.normal(ks[4], (planes,), jnp.float32),
        "bn1_v": jnp.abs(1.0 + 0.1 * jax.random.normal(ks[5], (planes,), jnp.float32)),
        "conv2_w": 0.1 * jax.random.normal(ks[6], (planes, planes, 3, 3), jnp.float32),
        "bn2_g": 1.0 + 0.1 * jax.random.normal(ks[7], (planes,), jnp.float32),
        "bn2_b": 0.1 * jax.random.normal(ks[8], (planes,), jnp.float32),
        "bn2_m": 0.05 * jax.random.normal(ks[9], (planes,), jnp.float32),
        "bn2_v": jnp.abs(1.0 + 0.1 * jax.random.normal(ks[10], (planes,), jnp.float32)),
    }

    out = jax.block_until_ready(jax.jit(basic_block_forward)(x, params))
    ref = jax.block_until_ready(jax.jit(reference_forward)(x, params))

    assert out.shape == (N, planes, H, W)
    err = float(jnp.max(jnp.abs(out - ref)))
    assert err < 1e-3, f"mismatch vs reference: max abs diff {err:.3e}"

    print("KERNEL_OK")
</pallas_src>

<mosaic_0001>
module attributes {stable_mosaic.version = 11 : i64} {
  func.func @kernel(%arg0: i32, %arg1: memref<32x128xf32, #tpu.memory_space<vmem>>, %arg2: memref<384x128xbf16, #tpu.memory_space<vmem>>, %arg3: memref<1x128xf32, #tpu.memory_space<vmem>>, %arg4: memref<384x128xbf16, #tpu.memory_space<vmem>>, %arg5: memref<1x128xf32, #tpu.memory_space<vmem>>, %arg6: memref<32x128xf32, #tpu.memory_space<vmem>>) attributes {dimension_semantics = [#tpu.dimension_semantics<parallel>], iteration_bounds = array<i64: 1>, scalar_prefetch = 0 : i64, scratch_operands = 0 : i64, tpu.core_type = #tpu.core_type<tc>, window_params = [{transform_indices = @transform_0, window_bounds = array<i64: 32, 128>}, {pipeline_mode = #tpu.pipeline_mode<synchronous>, transform_indices = @transform_1, window_bounds = array<i64: 384, 128>}, {pipeline_mode = #tpu.pipeline_mode<synchronous>, transform_indices = @transform_2, window_bounds = array<i64: 1, 128>}, {pipeline_mode = #tpu.pipeline_mode<synchronous>, transform_indices = @transform_3, window_bounds = array<i64: 384, 128>}, {pipeline_mode = #tpu.pipeline_mode<synchronous>, transform_indices = @transform_4, window_bounds = array<i64: 1, 128>}, {transform_indices = @transform_5, window_bounds = array<i64: 32, 128>}]} {
    %c0 = arith.constant 0 : index
    %c0_0 = arith.constant 0 : index
    %0 = vector.load %arg1[%c0, %c0_0] : memref<32x128xf32, #tpu.memory_space<vmem>>, vector<32x128xf32>
    %1 = tpu.iota {dimensions = array<i32: 0>} : vector<32x128xi32>
    %c16_i32 = arith.constant 16 : i32
    %c0_i32 = arith.constant 0 : i32
    %2 = arith.cmpi eq, %c16_i32, %c0_i32 : i32
    %c1_i32 = arith.constant 1 : i32
    %3 = arith.select %2, %c1_i32, %c16_i32 : i32
    %4 = vector.broadcast %3 : i32 to vector<32x128xi32>
    %5 = arith.remsi %1, %4 : vector<32x128xi32>
    %c0_i32_1 = arith.constant 0 : i32
    %6 = vector.broadcast %c0_i32_1 : i32 to vector<32x128xi32>
    %7 = arith.cmpi ne, %5, %6 : vector<32x128xi32>
    %c0_i32_2 = arith.constant 0 : i32
    %8 = vector.broadcast %c0_i32_2 : i32 to vector<32x128xi32>
    %9 = arith.cmpi slt, %5, %8 : vector<32x128xi32>
    %c0_i32_3 = arith.constant 0 : i32
    %10 = arith.cmpi slt, %3, %c0_i32_3 : i32
    %11 = vector.broadcast %10 : i1 to vector<32x128xi1>
    %12 = vector.broadcast %11 : vector<32x128xi1> to vector<32x128xi1>
    %13 = arith.xori %9, %12 : vector<32x128xi1>
    %14 = arith.andi %13, %7 : vector<32x128xi1>
    %15 = vector.broadcast %3 : i32 to vector<32x128xi32>
    %16 = arith.addi %5, %15 : vector<32x128xi32>
    %17 = arith.select %14, %16, %5 : vector<32x128xi1>, vector<32x128xi32>
    %c1_i32_4 = arith.constant 1 : i32
    %18 = tpu.dynamic_rotate %0 by %c1_i32_4 dim 0 : vector<32x128xf32>, i32 -> vector<32x128xf32>
    %c31_i32 = arith.constant 31 : i32
    %19 = tpu.dynamic_rotate %0 by %c31_i32 dim 0 : vector<32x128xf32>, i32 -> vector<32x128xf32>
    %c0_i32_5 = arith.constant 0 : i32
    %20 = vector.broadcast %c0_i32_5 : i32 to vector<32x128xi32>
    %21 = arith.cmpi ne, %17, %20 : vector<32x128xi32>
    %cst = arith.constant 0.000000e+00 : f32
    %22 = vector.broadcast %cst : f32 to vector<32x128xf32>
    %23 = arith.select %21, %18, %22 : vector<32x128xi1>, vector<32x128xf32>
    %c15_i32 = arith.constant 15 : i32
    %24 = vector.broadcast %c15_i32 : i32 to vector<32x128xi32>
    %25 = arith.cmpi ne, %17, %24 : vector<32x128xi32>
    %cst_6 = arith.constant 0.000000e+00 : f32
    %26 = vector.broadcast %cst_6 : f32 to vector<32x128xf32>
    %27 = arith.select %25, %19, %26 : vector<32x128xi1>, vector<32x128xf32>
    %28 = tpu.concatenate %23, %0, %27 in 1 : vector<32x128xf32>, vector<32x128xf32>, vector<32x128xf32> -> vector<32x384xf32>
    %29 = arith.truncf %28 : vector<32x384xf32> to vector<32x384xbf16>
    %c0_7 = arith.constant 0 : index
    %c0_8 = arith.constant 0 : index
    %30 = vector.load %arg2[%c0_7, %c0_8] : memref<384x128xbf16, #tpu.memory_space<vmem>>, vector<384x128xbf16>
    %cst_9 = arith.constant dense<0.000000e+00> : vector<32x128xf32>
    %31 = tpu.matmul %29, %30, %cst_9 {dimension_numbers = #tpu.dot_dimension_numbers<[1], [0], [0], [1], [0, 0, 1, 1], [], []>} : vector<32x384xbf16>, vector<384x128xbf16>, vector<32x128xf32> -> vector<32x128xf32>
    %c0_10 = arith.constant 0 : index
    %c0_11 = arith.constant 0 : index
    %32 = vector.load %arg3[%c0_10, %c0_11] : memref<1x128xf32, #tpu.memory_space<vmem>>, vector<1x128xf32>
    %33 = vector.broadcast %32 : vector<1x128xf32> to vector<32x128xf32>
    %34 = arith.addf %31, %33 : vector<32x128xf32>
    %cst_12 = arith.constant 0.000000e+00 : f32
    %35 = vector.broadcast %cst_12 : f32 to vector<32x128xf32>
    %36 = arith.maximumf %34, %35 : vector<32x128xf32>
    %37 = tpu.iota {dimensions = array<i32: 0>} : vector<32x128xi32>
    %c16_i32_13 = arith.constant 16 : i32
    %c0_i32_14 = arith.constant 0 : i32
    %38 = arith.cmpi eq, %c16_i32_13, %c0_i32_14 : i32
    %c1_i32_15 = arith.constant 1 : i32
    %39 = arith.select %38, %c1_i32_15, %c16_i32_13 : i32
    %40 = vector.broadcast %39 : i32 to vector<32x128xi32>
    %41 = arith.remsi %37, %40 : vector<32x128xi32>
    %c0_i32_16 = arith.constant 0 : i32
    %42 = vector.broadcast %c0_i32_16 : i32 to vector<32x128xi32>
    %43 = arith.cmpi ne, %41, %42 : vector<32x128xi32>
    %c0_i32_17 = arith.constant 0 : i32
    %44 = vector.broadcast %c0_i32_17 : i32 to vector<32x128xi32>
    %45 = arith.cmpi slt, %41, %44 : vector<32x128xi32>
    %c0_i32_18 = arith.constant 0 : i32
    %46 = arith.cmpi slt, %39, %c0_i32_18 : i32
    %47 = vector.broadcast %46 : i1 to vector<32x128xi1>
    %48 = vector.broadcast %47 : vector<32x128xi1> to vector<32x128xi1>
    %49 = arith.xori %45, %48 : vector<32x128xi1>
    %50 = arith.andi %49, %43 : vector<32x128xi1>
    %51 = vector.broadcast %39 : i32 to vector<32x128xi32>
    %52 = arith.addi %41, %51 : vector<32x128xi32>
    %53 = arith.select %50, %52, %41 : vector<32x128xi1>, vector<32x128xi32>
    %c1_i32_19 = arith.constant 1 : i32
    %54 = tpu.dynamic_rotate %36 by %c1_i32_19 dim 0 : vector<32x128xf32>, i32 -> vector<32x128xf32>
    %c31_i32_20 = arith.constant 31 : i32
    %55 = tpu.dynamic_rotate %36 by %c31_i32_20 dim 0 : vector<32x128xf32>, i32 -> vector<32x128xf32>
    %c0_i32_21 = arith.constant 0 : i32
    %56 = vector.broadcast %c0_i32_21 : i32 to vector<32x128xi32>
    %57 = arith.cmpi ne, %53, %56 : vector<32x128xi32>
    %cst_22 = arith.constant 0.000000e+00 : f32
    %58 = vector.broadcast %cst_22 : f32 to vector<32x128xf32>
    %59 = arith.select %57, %54, %58 : vector<32x128xi1>, vector<32x128xf32>
    %c15_i32_23 = arith.constant 15 : i32
    %60 = vector.broadcast %c15_i32_23 : i32 to vector<32x128xi32>
    %61 = arith.cmpi ne, %53, %60 : vector<32x128xi32>
    %cst_24 = arith.constant 0.000000e+00 : f32
    %62 = vector.broadcast %cst_24 : f32 to vector<32x128xf32>
    %63 = arith.select %61, %55, %62 : vector<32x128xi1>, vector<32x128xf32>
    %64 = tpu.concatenate %59, %36, %63 in 1 : vector<32x128xf32>, vector<32x128xf32>, vector<32x128xf32> -> vector<32x384xf32>
    %65 = arith.truncf %64 : vector<32x384xf32> to vector<32x384xbf16>
    %c0_25 = arith.constant 0 : index
    %c0_26 = arith.constant 0 : index
    %66 = vector.load %arg4[%c0_25, %c0_26] : memref<384x128xbf16, #tpu.memory_space<vmem>>, vector<384x128xbf16>
    %cst_27 = arith.constant dense<0.000000e+00> : vector<32x128xf32>
    %67 = tpu.matmul %65, %66, %cst_27 {dimension_numbers = #tpu.dot_dimension_numbers<[1], [0], [0], [1], [0, 0, 1, 1], [], []>} : vector<32x384xbf16>, vector<384x128xbf16>, vector<32x128xf32> -> vector<32x128xf32>
    %c0_28 = arith.constant 0 : index
    %c0_29 = arith.constant 0 : index
    %68 = vector.load %arg5[%c0_28, %c0_29] : memref<1x128xf32, #tpu.memory_space<vmem>>, vector<1x128xf32>
    %69 = vector.broadcast %68 : vector<1x128xf32> to vector<32x128xf32>
    %70 = arith.addf %67, %69 : vector<32x128xf32>
    %71 = arith.addf %70, %0 : vector<32x128xf32>
    %c0_30 = arith.constant 0 : index
    %c0_31 = arith.constant 0 : index
    %72 = vector.load %arg6[%c0_30, %c0_31] : memref<32x128xf32, #tpu.memory_space<vmem>>, vector<32x128xf32>
    tpu.vector_store %arg6[%c0_30, %c0_31], %71 {strides = array<i32>} : memref<32x128xf32, #tpu.memory_space<vmem>>, vector<32x128xf32>,
    return
  }
  func.func @transform_0(%arg0: i32) -> (i32, i32) {
    %c0_i32 = arith.constant 0 : i32
    %c0_i32_0 = arith.constant 0 : i32
    return %arg0, %c0_i32 : i32, i32
  }
  func.func @transform_1(%arg0: i32) -> (i32, i32) {
    %c0_i32 = arith.constant 0 : i32
    %c0_i32_0 = arith.constant 0 : i32
    %c0_i32_1 = arith.constant 0 : i32
    return %c0_i32, %c0_i32_0 : i32, i32
  }
  func.func @transform_2(%arg0: i32) -> (i32, i32) {
    %c0_i32 = arith.constant 0 : i32
    %c0_i32_0 = arith.constant 0 : i32
    %c0_i32_1 = arith.constant 0 : i32
    return %c0_i32, %c0_i32_0 : i32, i32
  }
  func.func @transform_3(%arg0: i32) -> (i32, i32) {
    %c0_i32 = arith.constant 0 : i32
    %c0_i32_0 = arith.constant 0 : i32
    %c0_i32_1 = arith.constant 0 : i32
    return %c0_i32, %c0_i32_0 : i32, i32
  }
  func.func @transform_4(%arg0: i32) -> (i32, i32) {
    %c0_i32 = arith.constant 0 : i32
    %c0_i32_0 = arith.constant 0 : i32
    %c0_i32_1 = arith.constant 0 : i32
    return %c0_i32, %c0_i32_0 : i32, i32
  }
  func.func @transform_5(%arg0: i32) -> (i32, i32) {
    %c0_i32 = arith.constant 0 : i32
    %c0_i32_0 = arith.constant 0 : i32
    return %arg0, %c0_i32 : i32, i32
  }
}

</mosaic_0001>

<bundles_post_ra>
// kernel: tile.13
= control target key start
LH: loop header
LB: loop body
LE: loop exit
PB: predicated region body
PF: predicated region fallthrough
CT: control target
= control target key end

     0   :  { %s28_s0 = inlined_call_operand.vmem [shape: f32[8], index: 0, kind: input, shape index: {}]   ;;  %s29_s1 = inlined_call_operand.vmem [shape: f32[16,8], index: 1, kind: output, shape index: {}]  }
   0x1   :  { %v4_v0 = vld [vmem:[%s28_s0] ss:$0 sm:$0xff] }
   0x2   :  { %5 = vst [vmem:[%s29_s1] sm:$0xff] %v4_v0  ;;  %8 = vst [vmem:[%s29_s1 + $0x8] sm:$0xff] %v4_v0 }

// kernel: tile.14
= control target key start
LH: loop header
LB: loop body
LE: loop exit
PB: predicated region body
PF: predicated region fallthrough
CT: control target
= control target key end

     0   :  { %s133_s10 = smov 120   ;;  %s134_s11 = smov 104   ;;  %vm3_vm0 = vcmask 64512   ;;  %vm9_vm1 = vcmask 1048512   ;;  %vm15_vm2 = vcmask 982912   ;;  %vm21_vm3 = vcmask 917312   ;;  %s209_s0 = inlined_call_operand.vmem [shape: f32[16,8], index: 0, kind: input, shape index: {}]   ;;  %s210_s1 = inlined_call_operand.vmem [shape: f32[1,128], index: 1, kind: output, shape index: {}]  }
   0x1   :  { %v103_v0 = vld [vmem:[%s209_s0 + $0xf] sm:$0x1]   ;;  %v105_v1 = vld [vmem:[%s209_s0 + $0xd] sm:$0x1]   ;;  %v104_v2 = vld [vmem:[%s209_s0 + $0xe] sm:$0x1]  }
   0x2   :  { %7 = vrot.lane.b32.xlu0 %v103_v0, %s133_s10  ;;  %19 = vrot.lane.b32.xlu1 %v105_v1, %s134_s11  ;;  %v106_v3 = vld [vmem:[%s209_s0 + $0xc] sm:$0x1]   ;;  %s135_s16 = smov 112   ;;  %s136_s17 = smov 96   ;;  %v107_v4 = vld [vmem:[%s209_s0 + $0xb] sm:$0x1]  }
   0x3   :  { %v108_v5 = vld [vmem:[%s209_s0 + $0xa] sm:$0x1]   ;;  %v2_v6 = vld [vmem:[%s209_s0] sm:$0x1]   ;;  %s137_s24 = smov 88   ;;  %s138_s25 = smov 80  }
   0x4   :  { %4 = vst.msk [vmem:[#allocation0] sm:$0x1] %vm3_vm0, %v2_v6   ;;  %v109_v7 = vld [vmem:[%s209_s0 + $0x9] sm:$0x1]   ;;  %v110_v8 = vld [vmem:[%s209_s0 + $0x8] sm:$0x1]  }
   0x5   :  { %s139_s30 = smov 72   ;;  %s140_s2 = smov 64   ;;  %v111_v9 = vld [vmem:[%s209_s0 + $0x7] sm:$0x1]   ;;  %v112_v10 = vld [vmem:[%s209_s0 + $0x6] sm:$0x1]  }
   0x6   :  { %13 = vrot.lane.b32.xlu0 %v104_v2, %s135_s16  ;;  %25 = vrot.lane.b32.xlu1 %v106_v3, %s136_s17  ;;  %s141_s7 = smov 56   ;;  %s142_s8 = smov 48   ;;  %v113_v11 = vld [vmem:[%s209_s0 + $0x5] sm:$0x1]   ;;  %v114_v12 = vld [vmem:[%s209_s0 + $0x4] sm:$0x1]  }
   0x7   :  { %s143_s13 = smov 40   ;;  %s144_s14 = smov 32   ;;  %v115_v13 = vld [vmem:[%s209_s0 + $0x3] sm:$0x1]   ;;  %v116_v14 = vld [vmem:[%s209_s0 + $0x2] sm:$0x1]  }
   0x8   :  { %s145_s19 = smov 24   ;;  %s146_s20 = smov 16   ;;  %v117_v15 = vld [vmem:[%s209_s0 + $0x1] sm:$0x1]   ;;  %vm27_vm4 = vcmask 851712   ;;  %vm33_vm5 = vcmask 786112  }
   0x9   :  { %s147_s0 = smov 8   ;;  %vm39_vm6 = vcmask 720512   ;;  %vm45_vm7 = vcmask 654912   ;;  %vm51_vm8 = vcmask 589312   ;;  %vm57_vm9 = vcmask 523712  }
   0xa   :  { %31 = vrot.lane.b32.xlu0 %v107_v4, %s137_s24  ;;  %37 = vrot.lane.b32.xlu1 %v108_v5, %s138_s25  ;;  %vm63_vm10 = vcmask 458112   ;;  %vm69_vm11 = vcmask 392512   ;;  %vm75_vm12 = vcmask 326912   ;;  %vm81_vm13 = vcmask 261312  }
   0xb   :  { %vm87_vm14 = vcmask 195712   ;;  %vm93_vm15 = vcmask 130112  }
   0xe   :  { %43 = vrot.lane.b32.xlu0 %v109_v7, %s139_s30  ;;  %49 = vrot.lane.b32.xlu1 %v110_v8, %s140_s2 }
  0x12   :  { %55 = vrot.lane.b32.xlu0 %v111_v9, %s141_s7  ;;  %61 = vrot.lane.b32.xlu1 %v112_v10, %s142_s8 }
  0x16   :  { %67 = vrot.lane.b32.xlu0 %v113_v11, %s143_s13  ;;  %73 = vrot.lane.b32.xlu1 %v114_v12, %s144_s14 }
  0x1a   :  { %79 = vrot.lane.b32.xlu0 %v115_v13, %s145_s19  ;;  %85 = vrot.lane.b32.xlu1 %v116_v14, %s146_s20 }
  0x1e   :  { %91 = vrot.lane.b32.xlu0 %v117_v15, %s147_s0 }
  0x74   :  { %v8_v16 = vpop.permute.xlu0 %7   ;;  %v20_v17 = vpop.permute.xlu1 %19  }
  0x75   :  { %10 = vst.msk [vmem:[#allocation0] sm:$0x1] %vm9_vm1, %v8_v16  }
  0x78   :  { %v14_v18 = vpop.permute.xlu0 %13   ;;  %v26_v19 = vpop.permute.xlu1 %25  }
  0x79   :  { %16 = vst.msk [vmem:[#allocation0] sm:$0x1] %vm15_vm2, %v14_v18  }
  0x7a   :  { %22 = vst.msk [vmem:[#allocation0] sm:$0x1] %vm21_vm3, %v20_v17  }
  0x7b   :  { %28 = vst.msk [vmem:[#allocation0] sm:$0x1] %vm27_vm4, %v26_v19  }
  0x7c   :  { %v32_v20 = vpop.permute.xlu0 %31   ;;  %v38_v21 = vpop.permute.xlu1 %37  }
  0x7d   :  { %34 = vst.msk [vmem:[#allocation0] sm:$0x1] %vm33_vm5, %v32_v20  }
  0x7e   :  { %40 = vst.msk [vmem:[#allocation0] sm:$0x1] %vm39_vm6, %v38_v21  }
  0x80   :  { %v44_v22 = vpop.permute.xlu0 %43   ;;  %v50_v23 = vpop.permute.xlu1 %49  }
  0x81   :  { %46 = vst.msk [vmem:[#allocation0] sm:$0x1] %vm45_vm7, %v44_v22  }
  0x82   :  { %52 = vst.msk [vmem:[#allocation0] sm:$0x1] %vm51_vm8, %v50_v23  }
  0x84   :  { %v56_v24 = vpop.permute.xlu0 %55   ;;  %v62_v25 = vpop.permute.xlu1 %61  }
  0x85   :  { %58 = vst.msk [vmem:[#allocation0] sm:$0x1] %vm57_vm9, %v56_v24  }
  0x86   :  { %64 = vst.msk [vmem:[#allocation0] sm:$0x1] %vm63_vm10, %v62_v25  }
  0x88   :  { %v68_v26 = vpop.permute.xlu0 %67   ;;  %v74_v27 = vpop.permute.xlu1 %73  }
  0x89   :  { %70 = vst.msk [vmem:[#allocation0] sm:$0x1] %vm69_vm11, %v68_v26  }
  0x8a   :  { %76 = vst.msk [vmem:[#allocation0] sm:$0x1] %vm75_vm12, %v74_v27  }
  0x8c   :  { %v80_v28 = vpop.permute.xlu0 %79   ;;  %v86_v29 = vpop.permute.xlu1 %85  }
  0x8d   :  { %82 = vst.msk [vmem:[#allocation0] sm:$0x1] %vm81_vm13, %v80_v28  }
  0x8e   :  { %88 = vst.msk [vmem:[#allocation0] sm:$0x1] %vm87_vm14, %v86_v29  }
  0x90   :  { %v92_v30 = vpop.permute.xlu0 %91  }
  0x91   :  { %94 = vst.msk [vmem:[#allocation0] sm:$0x1] %vm93_vm15, %v92_v30  }
  0x98   :  { %v99_v31 = vld [vmem:[#allocation0] sm:$0x1] }
  0x99   :  { %102 = vst [vmem:[%s210_s1] sm:$0x1] %v99_v31 }

// kernel: basic_block_forward.1
= control target key start
LH: loop header
LB: loop body
LE: loop exit
PB: predicated region body
PF: predicated region fallthrough
CT: control target
= control target key end

     0   :  { %v25_v6 = vlaneseq  ;;  %vm997_vm5 = vmmov 1   ;;  %s1320_s1 = inlined_call_operand.vmem [shape: bf16[384,128], index: 1, kind: input, shape index: {}]   ;;  %s1321_s0 = inlined_call_operand.vmem [shape: f32[32,128], index: 0, kind: input, shape index: {}]   ;;  %s1322_s3 = inlined_call_operand.vmem [shape: bf16[384,128], index: 3, kind: input, shape index: {}]   ;;  %s1323_s2 = inlined_call_operand.vmem [shape: f32[1,128], index: 2, kind: input, shape index: {}]   ;;  %s1324_s4 = inlined_call_operand.vmem [shape: f32[1,128], index: 4, kind: input, shape index: {}]   ;;  %s1325_s5 = inlined_call_operand.vmem [shape: f32[32,128], index: 5, kind: output, shape index: {}]  }
   0x1   :  { %v949_v0 = vld [vmem:[%s1320_s1 + $0x78] sm:$0xff]   ;;  %v951_v2 = vld [vmem:[%s1320_s1 + $0x70] sm:$0xff]   ;;  %v954_v5 = vld [vmem:[%s1320_s1 + $0x68] sm:$0xff]  }
   0x2   :  { %v950_v1 = vld [vmem:[%s1320_s1 + $0x38] sm:$0xff]   ;;  %832 = vmatprep.subr.bf16.mxu0 %v949_v0  ;;  %v953_v4 = vld [vmem:[%s1320_s1 + $0x30] sm:$0xff]   ;;  %v956_v8 = vld [vmem:[%s1320_s1 + $0x28] sm:$0xff]   ;;  %v1058_v11 = vshrl.u32 %v25_v6, 7 }
   0x3   :  { %833 = vmatpush3.bf16.msra.mxu0 %v950_v1  ;;  %v952_v3 = vld [vmem:[%s1320_s1 + $0xb8] sm:$0xff]   ;;  %v955_v7 = vld [vmem:[%s1320_s1 + $0xb0] sm:$0xff]   ;;  %v957_v9 = vld [vmem:[%s1320_s1 + $0x60] sm:$0xff]  }
   0x4   :  { %834 = vmatprep.subr.bf16.mxu0 %v951_v2  ;;  %908 = vmatprep.subr.bf16.mxu1 %v952_v3  ;;  %v958_v10 = vld [vmem:[%s1320_s1 + $0xa8] sm:$0xff]   ;;  %v959_v12 = vld [vmem:[%s1320_s1 + $0x20] sm:$0xff]   ;;  %v960_v13 = vld [vmem:[%s1320_s1 + $0x58] sm:$0xff]   ;;  %v27_v15 = vadd.s32 8, %v1058_v11  ;;  %v29_v17 = vadd.s32 24, %v1058_v11  ;;  %v34_v20 = vand.u32 15, %v1058_v11 }
   0x5   :  { %909 = vmatpush3.bf16.msra.mxu1 %v952_v3  ;;  %v961_v14 = vld [vmem:[%s1320_s1 + $0xa0] sm:$0xff]   ;;  %v962_v16 = vld [vmem:[%s1320_s1 + $0x18] sm:$0xff]   ;;  %v963_v19 = vld [vmem:[%s1320_s1 + $0x50] sm:$0xff]   ;;  %v28_v25 = vadd.s32 16, %v1058_v11  ;;  %vm82_vm0 = vcmp.lt.s32.totalorder %v1058_v11, 1  ;;  %vm91_vm2 = vcmp.lt.s32.totalorder %v1058_v11, 7 }
   0x6   :  { %910 = vmatprep.subr.bf16.mxu1 %v955_v7  ;;  %v964_v18 = vld [vmem:[%s1320_s1 + $0x98] sm:$0xff]   ;;  %v41_v21 = vand.u32 15, %v27_v15  ;;  %v965_v22 = vld [vmem:[%s1320_s1 + $0x10] sm:$0xff]   ;;  %v55_v23 = vand.u32 15, %v29_v17  ;;  %v966_v26 = vld [vmem:[%s1320_s1 + $0x48] sm:$0xff]   ;;  %vm1095_vm1 = vcmp.ne.s32.totalorder %v34_v20, 0 }
   0x7   :  { %835 = vmatpush3.bf16.msra.mxu0 %v953_v4  ;;  %v967_v24 = vld [vmem:[%s1320_s1 + $0x90] sm:$0xff]   ;;  %v968_v27 = vld [vmem:[%s1320_s1 + $0x8] sm:$0xff]   ;;  %v1106_v30 = vld [vmem:[%s1321_s0] sm:$0xff]  ;;  %v48_v35 = vand.u32 15, %v28_v25 }
   0x8   :  { %836 = vmatprep.subr.bf16.mxu0 %v954_v5  ;;  %v970_v29 = vld [vmem:[%s1320_s1 + $0x88] sm:$0xff]   ;;  %v1116_v32 = vld [vmem:[%s1321_s0 + $0x18] sm:$0xff]  ;;  %vm1118_vm3 = vcmp.ne.s32.totalorder %v41_v21, 15  ;;  %vm1122_vm4 = vcmp.ne.s32.totalorder %v55_v23, 15  ;;  %v969_v36 = vld [vmem:[%s1320_s1 + $0x40] sm:$0xff]   ;;  %v78_v37 = vrot.slane %v1106_v30, 7 }
   0x9   :  { %911 = vmatpush3.bf16.msra.mxu1 %v955_v7  ;;  %v1111_v31 = vld [vmem:[%s1321_s0 + $0x8] sm:$0xff]  ;;  %v81_v40 = vrot.slane %v1116_v32, 7  ;;  %v971_v41 = vld [vmem:[%s1320_s1] sm:$0xff]   ;;  %vm1140_vm6 = vmpackc.low %vm997_vm5, %vm1095_vm1  ;;  %v87_v44 = vrot.slane %v1106_v30, 1  ;;  %v90_v48 = vrot.slane %v1116_v32, 1  ;;  %vm98_vm9 = vcmp.ne.s32.totalorder %v48_v35, 0 }
   0xa   :  { %912 = vmatprep.subr.bf16.mxu1 %v958_v10  ;;  %v79_v38 = vrot.slane %v1111_v31, 7  ;;  %v113_v39 = vpack.c.bf16 %v1111_v31, %v1106_v30  ;;  %v1147_v43 = vld [vmem:[%s1321_s0 + $0x10] sm:$0xff]  ;;  %v88_v45 = vrot.slane %v1111_v31, 1  ;;  %vm1155_vm7 = vmpackc.low %vm1118_vm3, %vm997_vm5  ;;  %v972_v51 = vld [vmem:[%s1320_s1 + $0x80] sm:$0xff]  }
   0xb   :  { %837 = vmatpush3.bf16.msra.mxu0 %v956_v8  ;;  %v89_v46 = vrot.slane %v1147_v43, 1  ;;  %v86_v50 = vsel %vm82_vm0, %v81_v40, %v78_v37  ;;  %vm1172_vm8 = vmpackc.low %vm1122_vm4, %vm997_vm5  ;;  %v973_v55 = vld [vmem:[%s1322_s3 + $0x78] sm:$0xff]   ;;  %v80_v57 = vrot.slane %v1147_v43, 7  ;;  %v95_v61 = vsel %vm91_vm2, %v90_v48, %v87_v44  ;;  %v976_v5 = vld [vmem:[%s1322_s3 + $0x70] sm:$0xff]  }
   0xc   :  { %838 = vmatprep.subr.bf16.mxu0 %v957_v9  ;;  %349 = vmatprep.mubr.bf16.mxu0 %v113_v39  ;;  %v85_v49 = vsel %vm82_vm0, %v78_v37, %v79_v38  ;;  %v94_v52 = vsel %vm91_vm2, %v87_v44, %v88_v45  ;;  %v974_v58 = vld [vmem:[%s1322_s3 + $0xb8] sm:$0xff]   ;;  %v116_v63 = vpack.c.bf16 %v1116_v32, %v1147_v43  ;;  %vm1195_vm10 = vmpackc.low %vm997_vm5, %vm98_vm9  ;;  %v977_v6 = vld [vmem:[%s1322_s3 + $0xb0] sm:$0xff]  }
   0xd   :  { %913 = vmatpush3.bf16.msra.mxu1 %v958_v10  ;;  %v93_v54 = vsel %vm91_vm2, %v88_v45, %v89_v46  ;;  %v784_v59 = vpack.c.bf16 %v85_v49, %v86_v50  ;;  %v92_v60 = vsel %vm91_vm2, %v89_v46, %v90_v48  ;;  %v975_v62 = vld [vmem:[%s1322_s3 + $0x38] sm:$0xff]   ;;  %v83_v2 = vsel %vm82_vm0, %v80_v57, %v81_v40  ;;  %v978_v7 = vld [vmem:[%s1322_s3 + $0x30] sm:$0xff]   ;;  %v979_v8 = vld [vmem:[%s1322_s3 + $0x68] sm:$0xff]  }
   0xe   :  { %914 = vmatprep.subr.bf16.mxu1 %v961_v14  ;;  %v790_v56 = vpack.c.bf16 %v93_v54, %v94_v52  ;;  %v793_v1 = vpack.c.bf16 %v95_v61, %v92_v60  ;;  %v84_v3 = vsel %vm82_vm0, %v79_v38, %v80_v57  ;;  %v980_v9 = vld [vmem:[%s1322_s3 + $0xa8] sm:$0xff]   ;;  %v985_v15 = vld [vmem:[%s1322_s3 + $0x58] sm:$0xff]   ;;  %v990_v20 = vld [vmem:[%s1322_s3 + $0x10] sm:$0xff]  }
   0xf   :  { %839 = vmatpush3.bf16.msra.mxu0 %v959_v12  ;;  %v787_v4 = vpack.c.bf16 %v83_v2, %v84_v3  ;;  %v981_v10 = vld [vmem:[%s1322_s3 + $0x28] sm:$0xff]   ;;  %v982_v12 = vld [vmem:[%s1322_s3 + $0x60] sm:$0xff]   ;;  %v987_v17 = vld [vmem:[%s1322_s3 + $0x18] sm:$0xff]  }
  0x10   :  { %840 = vmatprep.subr.bf16.mxu0 %v960_v13  ;;  %924 = vmatprep.mubr.msk.bf16.mxu1 %vm1155_vm7, %v790_v56  ;;  %v983_v13 = vld [vmem:[%s1322_s3 + $0xa0] sm:$0xff]   ;;  %v991_v21 = vld [vmem:[%s1322_s3 + $0x48] sm:$0xff]  }
  0x11   :  { %915 = vmatpush3.bf16.msra.mxu1 %v961_v14  ;;  %v984_v14 = vld [vmem:[%s1322_s3 + $0x20] sm:$0xff]   ;;  %v993_v23 = vld [vmem:[%s1322_s3 + $0x8] sm:$0xff]  }
  0x12   :  { %916 = vmatprep.subr.bf16.mxu1 %v964_v18  ;;  %v995_v25 = vld [vmem:[%s1322_s3 + $0x80] sm:$0xff]  }
  0x13   :  { %841 = vmatpush3.bf16.msra.mxu0 %v962_v16  ;;  %v986_v16 = vld [vmem:[%s1322_s3 + $0x98] sm:$0xff]   ;;  %v758_v34 = vld [vmem:[%s1323_s2] ss:$0 sm:$0xff] }
  0x14   :  { %842 = vmatprep.subr.bf16.mxu0 %v963_v19  ;;  %v989_v19 = vld [vmem:[%s1322_s3 + $0x90] sm:$0xff]   ;;  %v795_v42 = vld [vmem:[%s1324_s4] ss:$0 sm:$0xff] }
  0x15   :  { %917 = vmatpush3.bf16.msra.mxu1 %v964_v18  ;;  %v988_v18 = vld [vmem:[%s1322_s3 + $0x50] sm:$0xff]  }
  0x16   :  { %918 = vmatprep.subr.bf16.mxu1 %v967_v24 }
  0x17   :  { %843 = vmatpush3.bf16.msra.mxu0 %v965_v22  ;;  %v992_v22 = vld [vmem:[%s1322_s3 + $0x88] sm:$0xff]  }
  0x18   :  { %844 = vmatprep.subr.bf16.mxu0 %v966_v26  ;;  %v996_v26 = vld [vmem:[%s1322_s3] sm:$0xff]  }
  0x19   :  { %919 = vmatpush3.bf16.msra.mxu1 %v967_v24  ;;  %v994_v24 = vld [vmem:[%s1322_s3 + $0x40] sm:$0xff]  }
  0x1a   :  { %920 = vmatprep.subr.bf16.mxu1 %v970_v29 }
  0x1b   :  { %845 = vmatpush3.bf16.msra.mxu0 %v968_v27 }
  0x1c   :  { %846 = vmatprep.subr.bf16.mxu0 %v969_v36 }
  0x1d   :  { %921 = vmatpush3.bf16.msra.mxu1 %v970_v29 }
  0x1e   :  { %922 = vmatprep.subr.bf16.mxu1 %v972_v51 }
  0x1f   :  { %847 = vmatpush3.bf16.msra.mxu0 %v971_v41 }
  0x20   :  { %870 = vmatprep.subr.bf16.mxu0 %v973_v55 }
  0x21   :  { %923 = vmatpush3.bf16.msra.mxu1 %v972_v51 }
  0x22   :  { %785 = vmatmul.mubr.msk.bf16.vlgmr.msra.gmra.mxu0 %vm1140_vm6, %v784_v59  ;;  %928 = vmatprep.subr.bf16.mxu1 %v974_v58 }
  0x23   :  { %357 = vmatprep.mubr.bf16.mxu0 %v116_v63  ;;  %871 = vmatpush3.bf16.msra.mxu0 %v975_v62 }
  0x24   :  { %925 = vmatmul.mubr.msk.bf16.vlgmr.msra.gmra.mxu1 %vm1172_vm8, %v793_v1  ;;  %872 = vmatprep.subr.bf16.mxu0 %v976_v5 }
  0x25   :  { %929 = vmatpush3.bf16.msra.mxu1 %v974_v58 }
  0x26   :  { %930 = vmatprep.subr.bf16.mxu1 %v977_v6 }
  0x27   :  { %873 = vmatpush3.bf16.msra.mxu0 %v978_v7 }
  0x28   :  { %874 = vmatprep.subr.bf16.mxu0 %v979_v8 }
  0x29   :  { %931 = vmatpush3.bf16.msra.mxu1 %v977_v6 }
  0x2a   :  { %788 = vmatmul.mubr.msk.bf16.gmra.mxu0 %vm1195_vm10, %v787_v4  ;;  %932 = vmatprep.subr.bf16.mxu1 %v980_v9 }
  0x2b   :  { %875 = vmatpush3.bf16.msra.mxu0 %v981_v10 }
  0x2c   :  { %876 = vmatprep.subr.bf16.mxu0 %v982_v12 }
  0x2d   :  { %933 = vmatpush3.bf16.msra.mxu1 %v980_v9 }
  0x2e   :  { %934 = vmatprep.subr.bf16.mxu1 %v983_v13 }
  0x2f   :  { %877 = vmatpush3.bf16.msra.mxu0 %v984_v14 }
  0x30   :  { %878 = vmatprep.subr.bf16.mxu0 %v985_v15 }
  0x31   :  { %935 = vmatpush3.bf16.msra.mxu1 %v983_v13 }
  0x32   :  { %936 = vmatprep.subr.bf16.mxu1 %v986_v16 }
  0x33   :  { %879 = vmatpush3.bf16.msra.mxu0 %v987_v17 }
  0x34   :  { %880 = vmatprep.subr.bf16.mxu0 %v988_v18 }
  0x35   :  { %937 = vmatpush3.bf16.msra.mxu1 %v986_v16 }
  0x36   :  { %938 = vmatprep.subr.bf16.mxu1 %v989_v19 }
  0x37   :  { %881 = vmatpush3.bf16.msra.mxu0 %v990_v20 }
  0x38   :  { %882 = vmatprep.subr.bf16.mxu0 %v991_v21 }
  0x39   :  { %939 = vmatpush3.bf16.msra.mxu1 %v989_v19 }
  0x3a   :  { %940 = vmatprep.subr.bf16.mxu1 %v992_v22 }
  0x3b   :  { %883 = vmatpush3.bf16.msra.mxu0 %v993_v23 }
  0x3c   :  { %884 = vmatprep.subr.bf16.mxu0 %v994_v24 }
  0x3d   :  { %941 = vmatpush3.bf16.msra.mxu1 %v992_v22 }
  0x3e   :  { %942 = vmatprep.subr.bf16.mxu1 %v995_v25 }
  0x3f   :  { %885 = vmatpush3.bf16.msra.mxu0 %v996_v26 }
  0x41   :  { %943 = vmatpush3.bf16.msra.mxu1 %v995_v25 }
  0xe2   :  { %v848_v27 = vpop.f32.mrf.mxu0 }
  0xe4   :  { %v849_v28 = vpop.f32.mrf.mxu0  ;;  %v926_v33 = vpop.f32.mrf.mxu1 }
  0xe5   :  { %v850_v29 = vadd.f32 %v849_v28, %v848_v27 }
  0xe6   :  { %v851_v35 = vpop.f32.mrf.mxu0  ;;  %v400_v36 = vpop.f32.mrf.mxu1 }
  0xe7   :  { %v352_v38 = vadd.f32 %v850_v29, %v758_v34 }
  0xe8   :  { %v852_v37 = vpop.f32.mrf.mxu0  ;;  %v927_v40 = vpop.f32.mrf.mxu1 }
  0xe9   :  { %v853_v39 = vadd.f32 %v852_v37, %v851_v35  ;;  %v401_v46 = vadd.f32 %v400_v36, %v352_v38 }
  0xea   :  { %v854_v41 = vpop.f32.mrf.mxu0  ;;  %v403_v45 = vpop.f32.mrf.mxu1 }
  0xeb   :  { %v355_v44 = vadd.f32 %v853_v39, %v758_v34  ;;  %v415_v55 = vmax.f32 %v401_v46, 0.0 }
  0xec   :  { %v855_v48 = vpop.f32.mrf.mxu0 }
  0xed   :  { %v856_v49 = vadd.f32 %v855_v48, %v854_v41  ;;  %v404_v50 = vadd.f32 %v403_v45, %v355_v44  ;;  %v427_v63 = vrot.slane %v415_v55, 1  ;;  %v419_v8 = vrot.slane %v415_v55, 7 }
  0xee   :  { %v857_v51 = vpop.f32.mrf.mxu0 }
  0xef   :  { %v360_v52 = vadd.f32 %v856_v49, %v758_v34  ;;  %v416_v54 = vmax.f32 %v404_v50, 0.0 }
  0xf0   :  { %v858_v56 = vpop.f32.mrf.mxu0 }
  0xf1   :  { %v409_v57 = vadd.f32 %v926_v33, %v360_v52  ;;  %v859_v58 = vadd.f32 %v858_v56, %v857_v51  ;;  %v444_v59 = vpack.c.bf16 %v416_v54, %v415_v55  ;;  %v428_v61 = vrot.slane %v416_v54, 1 }
  0xf2   :  { %v420_v3 = vrot.slane %v416_v54, 7 }
  0xf3   :  { %v417_v60 = vmax.f32 %v409_v57, 0.0  ;;  %v363_v62 = vadd.f32 %v859_v58, %v758_v34  ;;  %680 = vmatprep.mubr.bf16.mxu0 %v444_v59  ;;  %v433_v6 = vsel %vm91_vm2, %v427_v63, %v428_v61 }
  0xf4   :  { %v425_v12 = vsel %vm82_vm0, %v419_v8, %v420_v3 }
  0xf5   :  { %v429_v1 = vrot.slane %v417_v60, 1  ;;  %v412_v2 = vadd.f32 %v927_v40, %v363_v62  ;;  %v421_v47 = vrot.slane %v417_v60, 7 }
  0xf7   :  { %v418_v4 = vmax.f32 %v412_v2, 0.0  ;;  %v432_v5 = vsel %vm91_vm2, %v428_v61, %v429_v1  ;;  %v424_v20 = vsel %vm82_vm0, %v420_v3, %v421_v47 }
  0xf8   :  { %v827_v7 = vpack.c.bf16 %v432_v5, %v433_v6 }
  0xf9   :  { %v422_v9 = vrot.slane %v418_v4, 7  ;;  %v430_v10 = vrot.slane %v418_v4, 1  ;;  %v447_v18 = vpack.c.bf16 %v418_v4, %v417_v60 }
  0xfa   :  { %944 = vmatprep.mubr.msk.bf16.mxu1 %vm1155_vm7, %v827_v7 }
  0xfb   :  { %v426_v13 = vsel %vm82_vm0, %v422_v9, %v419_v8  ;;  %v431_v14 = vsel %vm91_vm2, %v429_v1, %v430_v10  ;;  %v434_v15 = vsel %vm91_vm2, %v430_v10, %v427_v63  ;;  %v423_v19 = vsel %vm82_vm0, %v421_v47, %v422_v9 }
  0xfc   :  { %v821_v16 = vpack.c.bf16 %v425_v12, %v426_v13  ;;  %v830_v17 = vpack.c.bf16 %v434_v15, %v431_v14  ;;  %v824_v21 = vpack.c.bf16 %v423_v19, %v424_v20 }
  0xfe   :  { %822 = vmatmul.mubr.msk.bf16.vlgmr.msra.gmra.mxu0 %vm1140_vm6, %v821_v16  ;;  %945 = vmatmul.mubr.msk.bf16.vlgmr.msra.gmra.mxu1 %vm1172_vm8, %v830_v17 }
  0xff   :  { %688 = vmatprep.mubr.bf16.mxu0 %v447_v18 }
 0x106   :  { %825 = vmatmul.mubr.msk.bf16.gmra.mxu0 %vm1195_vm10, %v824_v21 }
 0x1be   :  { %v886_v22 = vpop.f32.mrf.mxu0  ;;  %v946_v23 = vpop.f32.mrf.mxu1 }
 0x1c0   :  { %v887_v24 = vpop.f32.mrf.mxu0  ;;  %v731_v53 = vpop.f32.mrf.mxu1 }
 0x1c1   :  { %v888_v25 = vadd.f32 %v887_v24, %v886_v22 }
 0x1c2   :  { %v889_v26 = vpop.f32.mrf.mxu0  ;;  %v947_v28 = vpop.f32.mrf.mxu1 }
 0x1c3   :  { %v683_v27 = vadd.f32 %v888_v25, %v795_v42 }
 0x1c4   :  { %v890_v29 = vpop.f32.mrf.mxu0  ;;  %v734_v36 = vpop.f32.mrf.mxu1 }
 0x1c5   :  { %v732_v33 = vadd.f32 %v731_v53, %v683_v27  ;;  %v891_v11 = vadd.f32 %v890_v29, %v889_v26 }
 0x1c6   :  { %v892_v34 = vpop.f32.mrf.mxu0 }
 0x1c7   :  { %v746_v35 = vadd.f32 %v732_v33, %v1106_v30  ;;  %v686_v0 = vadd.f32 %v891_v11, %v795_v42 }
 0x1c8   :  { %v893_v37 = vpop.f32.mrf.mxu0 }
 0x1c9   :  { %750 = vst [vmem:[%s1325_s5] sm:$0xff] %v746_v35  ;;  %v735_v38 = vadd.f32 %v734_v36, %v686_v0  ;;  %v894_v39 = vadd.f32 %v893_v37, %v892_v34 }
 0x1ca   :  { %v895_v40 = vpop.f32.mrf.mxu0 }
 0x1cb   :  { %v747_v41 = vadd.f32 %v735_v38, %v1111_v31  ;;  %v691_v44 = vadd.f32 %v894_v39, %v795_v42 }
 0x1cc   :  { %v896_v45 = vpop.f32.mrf.mxu0 }
 0x1cd   :  { %751 = vst [vmem:[%s1325_s5 + $0x8] sm:$0xff] %v747_v41  ;;  %v740_v46 = vadd.f32 %v946_v23, %v691_v44  ;;  %v897_v30 = vadd.f32 %v896_v45, %v895_v40 }
 0x1cf   :  { %v748_v48 = vadd.f32 %v740_v46, %v1147_v43  ;;  %v694_v49 = vadd.f32 %v897_v30, %v795_v42 }
 0x1d1   :  { %752 = vst [vmem:[%s1325_s5 + $0x10] sm:$0xff] %v748_v48  ;;  %v743_v50 = vadd.f32 %v947_v28, %v694_v49 }
 0x1d3   :  { %v749_v51 = vadd.f32 %v743_v50, %v1116_v32 }
 0x1d5   :  { %753 = vst [vmem:[%s1325_s5 + $0x18] sm:$0xff] %v749_v51 }

</bundles_post_ra>
